<compile_context>
chip_gen: v5e
topology: v5e:2x2
jax: 0.10.0
libtpu: 0.0.40
codegen_flags: <defaults>
</compile_context>

<pallas_src>
import functools
import math

import jax
import jax.numpy as jnp
from jax.experimental import pallas as pl
from jax.experimental.pallas import tpu as pltpu

LN_EPS = 1e-5
NEG_INF = -1e9


# ----------------------------------------------------------------------------
# in-kernel helpers
# ----------------------------------------------------------------------------
def _layernorm(x, w, b, eps):
    mu = jnp.mean(x, axis=-1, keepdims=True)
    xc = x - mu
    var = jnp.mean(xc * xc, axis=-1, keepdims=True)
    return xc * jax.lax.rsqrt(var + eps) * w + b


# ----------------------------------------------------------------------------
# attention sublayer kernel: pre-LN + per-head QKV/attn/out-proj, grid=(B, H)
# ----------------------------------------------------------------------------
def attention_block_kernel(x_ref,
                           ln1_w_ref, ln1_b_ref,
                           wq_ref, bq_ref, wk_ref, bk_ref, wv_ref, bv_ref,
                           wo_ref, bo_ref,
                           o_ref, acc_ref, *, scale):
    h = pl.program_id(1)
    x = x_ref[0].astype(jnp.float32)                       # (S, D)
    S = x.shape[0]

    @pl.when(h == 0)
    def _():
        # residual + output-projection bias (bias added exactly once)
        acc_ref[...] = x + bo_ref[...]

    ln_x = _layernorm(x, ln1_w_ref[...], ln1_b_ref[...], LN_EPS)
    ln_bf = ln_x.astype(jnp.bfloat16)

    # per-head projections: head weights arrive via leading-axis block indexing
    q = jnp.dot(ln_bf, wq_ref[0], preferred_element_type=jnp.float32) + bq_ref[0]
    k = jnp.dot(ln_bf, wk_ref[0], preferred_element_type=jnp.float32) + bk_ref[0]
    v = jnp.dot(ln_bf, wv_ref[0], preferred_element_type=jnp.float32) + bv_ref[0]

    # scores with in-kernel causal mask (no (S,S) mask DMA)
    s = jax.lax.dot_general(
        q.astype(jnp.bfloat16), k.astype(jnp.bfloat16),
        (((1,), (1,)), ((), ())),
        preferred_element_type=jnp.float32) * scale        # (S, S)
    row = jax.lax.broadcasted_iota(jnp.int32, (S, S), 0)
    col = jax.lax.broadcasted_iota(jnp.int32, (S, S), 1)
    s = jnp.where(row >= col, s, NEG_INF)

    # softmax (f32), denominator via EUP approximate reciprocal
    s = s - jnp.max(s, axis=-1, keepdims=True)
    p = jnp.exp(s)
    l = jnp.sum(p, axis=-1, keepdims=True)
    p = p * pl.reciprocal(l, approx=True)

    c = jnp.dot(p.astype(jnp.bfloat16), v.astype(jnp.bfloat16),
                preferred_element_type=jnp.float32)        # (S, dh)
    # concat-over-heads + W_o  ==  sum over heads of c_h @ W_o[h]
    acc_ref[...] += jnp.dot(c.astype(jnp.bfloat16), wo_ref[0],
                            preferred_element_type=jnp.float32)

    @pl.when(h == pl.num_programs(1) - 1)
    def _():
        o_ref[0] = acc_ref[...].astype(o_ref.dtype)


# ----------------------------------------------------------------------------
# feed-forward sublayer kernel: pre-LN + W1 + GELU + W2 + residual
# ----------------------------------------------------------------------------
def ffn_block_kernel(x_ref, ln2_w_ref, ln2_b_ref,
                     w1_ref, b1_ref, w2_ref, b2_ref, o_ref):
    x = x_ref[0].astype(jnp.float32)                       # (TS, D)
    ln_x = _layernorm(x, ln2_w_ref[...], ln2_b_ref[...], LN_EPS)
    h1 = jnp.dot(ln_x.astype(jnp.bfloat16), w1_ref[...],
                 preferred_element_type=jnp.float32) + b1_ref[...]
    # TODO(synk): FeedForward activation assumed GPT-style GELU (tanh approx);
    # exact erf GELU / ReLU would be a one-line change.
    h1 = jax.nn.gelu(h1, approximate=True)
    ff = jnp.dot(h1.astype(jnp.bfloat16), w2_ref[...],
                 preferred_element_type=jnp.float32) + b2_ref[...]
    o_ref[0] = (x + ff).astype(o_ref.dtype)


# ----------------------------------------------------------------------------
# final LayerNorm + tied lm_head, tiled over the vocab dimension
# ----------------------------------------------------------------------------
def lm_head_kernel(x_ref, lnf_w_ref, lnf_b_ref, wout_ref, o_ref):
    x = x_ref[0].astype(jnp.float32)                       # (S, D)
    ln_x = _layernorm(x, lnf_w_ref[...], lnf_b_ref[...], LN_EPS)
    o_ref[0] = jnp.dot(ln_x.astype(jnp.bfloat16), wout_ref[...],
                       preferred_element_type=jnp.float32).astype(o_ref.dtype)


# ----------------------------------------------------------------------------
# wrappers
# ----------------------------------------------------------------------------
def _seq_tile(S):
    for ts in (512, 256, 128):
        if S % ts == 0:
            return ts
    return S


def _vocab_tile(V):
    for tv in (4096, 2048, 1024, 512, 256, 128):
        if V % tv == 0:
            return tv
    return V


def run_attention(x, p, n_heads):
    B, S, D = x.shape
    dh = D // n_heads
    kernel = functools.partial(attention_block_kernel, scale=1.0 / math.sqrt(dh))
    in_specs = [
        pl.BlockSpec((1, S, D), lambda b, h: (b, 0, 0)),        # x (bf16)
        pl.BlockSpec((1, D), lambda b, h: (0, 0)),              # ln1_w
        pl.BlockSpec((1, D), lambda b, h: (0, 0)),              # ln1_b
        pl.BlockSpec((1, D, dh), lambda b, h: (h, 0, 0)),       # wq[h]
        pl.BlockSpec((1, 1, dh), lambda b, h: (h, 0, 0)),       # bq[h]
        pl.BlockSpec((1, D, dh), lambda b, h: (h, 0, 0)),       # wk[h]
        pl.BlockSpec((1, 1, dh), lambda b, h: (h, 0, 0)),       # bk[h]
        pl.BlockSpec((1, D, dh), lambda b, h: (h, 0, 0)),       # wv[h]
        pl.BlockSpec((1, 1, dh), lambda b, h: (h, 0, 0)),       # bv[h]
        pl.BlockSpec((1, dh, D), lambda b, h: (h, 0, 0)),       # wo[h]
        pl.BlockSpec((1, D), lambda b, h: (0, 0)),              # bo
    ]
    return pl.pallas_call(
        kernel,
        grid=(B, n_heads),
        in_specs=in_specs,
        out_specs=pl.BlockSpec((1, S, D), lambda b, h: (b, 0, 0)),
        out_shape=jax.ShapeDtypeStruct((B, S, D), jnp.bfloat16),
        scratch_shapes=[pltpu.VMEM((S, D), jnp.float32)],
        compiler_params=pltpu.CompilerParams(
            dimension_semantics=("parallel", "arbitrary")),
    )(x, p["ln1_w"], p["ln1_b"],
      p["wq"], p["bq"], p["wk"], p["bk"], p["wv"], p["bv"],
      p["wo"], p["bo"])


def run_ffn(x, p):
    B, S, D = x.shape
    F = p["w1"].shape[1]
    TS = _seq_tile(S)
    in_specs = [
        pl.BlockSpec((1, TS, D), lambda b, s: (b, s, 0)),       # x (bf16)
        pl.BlockSpec((1, D), lambda b, s: (0, 0)),              # ln2_w
        pl.BlockSpec((1, D), lambda b, s: (0, 0)),              # ln2_b
        pl.BlockSpec((D, F), lambda b, s: (0, 0)),              # w1 (bf16)
        pl.BlockSpec((1, F), lambda b, s: (0, 0)),              # b1
        pl.BlockSpec((F, D), lambda b, s: (0, 0)),              # w2 (bf16)
        pl.BlockSpec((1, D), lambda b, s: (0, 0)),              # b2
    ]
    return pl.pallas_call(
        ffn_block_kernel,
        grid=(B, S // TS),
        in_specs=in_specs,
        out_specs=pl.BlockSpec((1, TS, D), lambda b, s: (b, s, 0)),
        out_shape=jax.ShapeDtypeStruct((B, S, D), jnp.bfloat16),
        compiler_params=pltpu.CompilerParams(
            dimension_semantics=("parallel", "parallel")),
    )(x, p["ln2_w"], p["ln2_b"], p["w1"], p["b1"], p["w2"], p["b2"])


def run_lm_head(x, lnf_w, lnf_b, w_out):
    B, S, D = x.shape
    V = w_out.shape[1]
    TV = _vocab_tile(V)
    in_specs = [
        pl.BlockSpec((1, S, D), lambda b, v: (b, 0, 0)),        # x (bf16)
        pl.BlockSpec((1, D), lambda b, v: (0, 0)),              # lnf_w
        pl.BlockSpec((1, D), lambda b, v: (0, 0)),              # lnf_b
        pl.BlockSpec((D, TV), lambda b, v: (0, v)),             # w_out tile (bf16)
    ]
    return pl.pallas_call(
        lm_head_kernel,
        grid=(B, V // TV),
        in_specs=in_specs,
        out_specs=pl.BlockSpec((1, S, TV), lambda b, v: (b, 0, v)),
        out_shape=jax.ShapeDtypeStruct((B, S, V), jnp.float32),
        compiler_params=pltpu.CompilerParams(
            dimension_semantics=("parallel", "parallel")),
    )(x, lnf_w, lnf_b, w_out)


def gpt_forward(input_ids, kp, n_heads):
    B, S = input_ids.shape
    # embedding lookup (gather) in plain JAX glue; dropout = identity (eval)
    x = (kp["tok_emb"][input_ids] + kp["pos_emb"][:S][None, :, :]
         ).astype(jnp.bfloat16)
    for layer_p in kp["layers"]:
        x = run_attention(x, layer_p, n_heads)
        x = run_ffn(x, layer_p)
    # tied weights: lm_head weight = token embedding (pre-transposed once)
    return run_lm_head(x, kp["lnf_w"], kp["lnf_b"], kp["w_out"])


# ----------------------------------------------------------------------------
# deterministic parameter init (GPT-2 style) + kernel-layout preparation
# ----------------------------------------------------------------------------
def init_params(key, vocab_size, max_len, n_layers, d_model, d_ff):
    keys = iter(jax.random.split(key, 4 + n_layers * 6))

    def lin(k, din, dout):
        return 0.02 * jax.random.normal(k, (din, dout), jnp.float32)

    params = {
        "tok_emb": 0.02 * jax.random.normal(next(keys), (vocab_size, d_model), jnp.float32),
        "pos_emb": 0.02 * jax.random.normal(next(keys), (max_len, d_model), jnp.float32),
        "lnf_w": jnp.ones((1, d_model), jnp.float32),
        "lnf_b": jnp.zeros((1, d_model), jnp.float32),
        "layers": [],
    }
    for _ in range(n_layers):
        params["layers"].append({
            "ln1_w": jnp.ones((1, d_model), jnp.float32),
            "ln1_b": jnp.zeros((1, d_model), jnp.float32),
            "wq": lin(next(keys), d_model, d_model), "bq": jnp.zeros((1, d_model), jnp.float32),
            "wk": lin(next(keys), d_model, d_model), "bk": jnp.zeros((1, d_model), jnp.float32),
            "wv": lin(next(keys), d_model, d_model), "bv": jnp.zeros((1, d_model), jnp.float32),
            "wo": lin(next(keys), d_model, d_model), "bo": jnp.zeros((1, d_model), jnp.float32),
            "ln2_w": jnp.ones((1, d_model), jnp.float32),
            "ln2_b": jnp.zeros((1, d_model), jnp.float32),
            "w1": lin(next(keys), d_model, d_ff), "b1": jnp.zeros((1, d_ff), jnp.float32),
            "w2": lin(next(keys), d_ff, d_model), "b2": jnp.zeros((1, d_model), jnp.float32),
        })
    return params


def prepare_params(params, n_heads):
    """bf16 weights, head-major attention layouts, cached transposed lm_head."""
    bf16 = jnp.bfloat16
    D = params["tok_emb"].shape[1]
    dh = D // n_heads
    kp = {
        "tok_emb": params["tok_emb"].astype(bf16),
        "pos_emb": params["pos_emb"].astype(bf16),
        # tied lm_head weight, transposed to [D, V] once (not per forward call)
        "w_out": jnp.asarray(params["tok_emb"].astype(bf16).T),
        "lnf_w": params["lnf_w"], "lnf_b": params["lnf_b"],
        "layers": [],
    }
    for p in params["layers"]:
        kp["layers"].append({
            "ln1_w": p["ln1_w"], "ln1_b": p["ln1_b"],
            "wq": p["wq"].reshape(D, n_heads, dh).transpose(1, 0, 2).astype(bf16),
            "bq": p["bq"].reshape(n_heads, 1, dh),
            "wk": p["wk"].reshape(D, n_heads, dh).transpose(1, 0, 2).astype(bf16),
            "bk": p["bk"].reshape(n_heads, 1, dh),
            "wv": p["wv"].reshape(D, n_heads, dh).transpose(1, 0, 2).astype(bf16),
            "bv": p["bv"].reshape(n_heads, 1, dh),
            "wo": p["wo"].reshape(n_heads, dh, D).astype(bf16),
            "bo": p["bo"],
            "ln2_w": p["ln2_w"], "ln2_b": p["ln2_b"],
            "w1": p["w1"].astype(bf16), "b1": p["b1"],
            "w2": p["w2"].astype(bf16), "b2": p["b2"],
        })
    return kp


# ----------------------------------------------------------------------------
# pure-JAX reference (f32 math, weights rounded to bf16 to match kernel storage)
# ----------------------------------------------------------------------------
def _q(w):
    return w.astype(jnp.bfloat16).astype(jnp.float32)


def gpt_forward_ref(input_ids, params, n_heads):
    B, S = input_ids.shape
    D = params["tok_emb"].shape[1]
    dh = D // n_heads
    x = _q(params["tok_emb"])[input_ids] + _q(params["pos_emb"])[:S][None, :, :]
    mask = jnp.tril(jnp.ones((S, S), jnp.float32))
    for p in params["layers"]:
        ln_x = _layernorm(x, p["ln1_w"], p["ln1_b"], LN_EPS)
        q = ln_x @ _q(p["wq"]) + p["bq"]
        k = ln_x @ _q(p["wk"]) + p["bk"]
        v = ln_x @ _q(p["wv"]) + p["bv"]
        q = q.reshape(B, S, n_heads, dh).transpose(0, 2, 1, 3)
        k = k.reshape(B, S, n_heads, dh).transpose(0, 2, 1, 3)
        v = v.reshape(B, S, n_heads, dh).transpose(0, 2, 1, 3)
        s = jnp.einsum("bhqd,bhkd->bhqk", q, k) / math.sqrt(dh)
        s = jnp.where(mask[None, None] > 0, s, NEG_INF)
        a = jax.nn.softmax(s, axis=-1)
        c = jnp.einsum("bhqk,bhkd->bhqd", a, v).transpose(0, 2, 1, 3).reshape(B, S, D)
        x = x + c @ _q(p["wo"]) + p["bo"]
        ln2 = _layernorm(x, p["ln2_w"], p["ln2_b"], LN_EPS)
        h1 = jax.nn.gelu(ln2 @ _q(p["w1"]) + p["b1"], approximate=True)
        x = x + h1 @ _q(p["w2"]) + p["b2"]
    x = _layernorm(x, params["lnf_w"], params["lnf_b"], LN_EPS)
    return x @ _q(params["tok_emb"]).T


if __name__ == "__main__":
    # small GPTModel config
    vocab_size, max_len, n_layers = 64, 16, 2
    d_model, n_heads, d_ff = 32, 4, 64
    B, S = 2, 8

    key = jax.random.PRNGKey(0)
    k_param, k_ids = jax.random.split(key)
    params = init_params(k_param, vocab_size, max_len, n_layers, d_model, d_ff)
    kparams = prepare_params(params, n_heads)
    input_ids = jax.random.randint(k_ids, (B, S), 0, vocab_size, dtype=jnp.int32)

    logits = gpt_forward(input_ids, kparams, n_heads)
    logits = jax.block_until_ready(logits)

    assert logits.shape == (B, S, vocab_size), logits.shape
    assert bool(jnp.all(jnp.isfinite(logits)))

    ref = gpt_forward_ref(input_ids, params, n_heads)
    err = float(jnp.max(jnp.abs(logits - ref)))
    assert err < 5e-2, err

    print("KERNEL_OK")
</pallas_src>

<mosaic_0001>
module attributes {stable_mosaic.version = 11 : i64} {
  func.func @attention_block_kernel(%arg0: i32, %arg1: i32, %arg2: memref<1x8x32xbf16, #tpu.memory_space<vmem>>, %arg3: memref<1x32xf32, #tpu.memory_space<vmem>>, %arg4: memref<1x32xf32, #tpu.memory_space<vmem>>, %arg5: memref<1x32x8xbf16, #tpu.memory_space<vmem>>, %arg6: memref<1x1x8xf32, #tpu.memory_space<vmem>>, %arg7: memref<1x32x8xbf16, #tpu.memory_space<vmem>>, %arg8: memref<1x1x8xf32, #tpu.memory_space<vmem>>, %arg9: memref<1x32x8xbf16, #tpu.memory_space<vmem>>, %arg10: memref<1x1x8xf32, #tpu.memory_space<vmem>>, %arg11: memref<1x8x32xbf16, #tpu.memory_space<vmem>>, %arg12: memref<1x32xf32, #tpu.memory_space<vmem>>, %arg13: memref<1x8x32xbf16, #tpu.memory_space<vmem>>, %arg14: memref<8x32xf32, #tpu.memory_space<vmem>>) attributes {dimension_semantics = [#tpu.dimension_semantics<parallel>, #tpu.dimension_semantics<arbitrary>], iteration_bounds = array<i64: 2, 4>, scalar_prefetch = 0 : i64, scratch_operands = 1 : i64, tpu.core_type = #tpu.core_type<tc>, window_params = [{transform_indices = @transform_0, window_bounds = array<i64: 1, 8, 32>}, {pipeline_mode = #tpu.pipeline_mode<synchronous>, transform_indices = @transform_1, window_bounds = array<i64: 1, 32>}, {pipeline_mode = #tpu.pipeline_mode<synchronous>, transform_indices = @transform_2, window_bounds = array<i64: 1, 32>}, {transform_indices = @transform_3, window_bounds = array<i64: 1, 32, 8>}, {transform_indices = @transform_4, window_bounds = array<i64: 1, 1, 8>}, {transform_indices = @transform_5, window_bounds = array<i64: 1, 32, 8>}, {transform_indices = @transform_6, window_bounds = array<i64: 1, 1, 8>}, {transform_indices = @transform_7, window_bounds = array<i64: 1, 32, 8>}, {transform_indices = @transform_8, window_bounds = array<i64: 1, 1, 8>}, {transform_indices = @transform_9, window_bounds = array<i64: 1, 8, 32>}, {pipeline_mode = #tpu.pipeline_mode<synchronous>, transform_indices = @transform_10, window_bounds = array<i64: 1, 32>}, {transform_indices = @transform_11, window_bounds = array<i64: 1, 8, 32>}]} {
    %c0 = arith.constant 0 : index
    %c0_0 = arith.constant 0 : index
    %c0_1 = arith.constant 0 : index
    %0 = vector.load %arg2[%c0, %c0_0, %c0_1] : memref<1x8x32xbf16, #tpu.memory_space<vmem>>, vector<1x8x32xbf16>
    %1 = vector.shape_cast %0 : vector<1x8x32xbf16> to vector<8x32xbf16>
    %2 = arith.extf %1 : vector<8x32xbf16> to vector<8x32xf32>
    %c0_i32 = arith.constant 0 : i32
    %3 = arith.cmpi eq, %arg1, %c0_i32 : i32
    %4 = arith.extui %3 : i1 to i32
    %c0_i32_2 = arith.constant 0 : i32
    %5 = arith.cmpi ne, %4, %c0_i32_2 : i32
    scf.if %5 {
      %c0_47 = arith.constant 0 : index
      %c0_48 = arith.constant 0 : index
      %83 = vector.load %arg12[%c0_47, %c0_48] : memref<1x32xf32, #tpu.memory_space<vmem>>, vector<1x32xf32>
      %84 = vector.broadcast %83 : vector<1x32xf32> to vector<8x32xf32>
      %85 = arith.addf %2, %84 : vector<8x32xf32>
      %c0_49 = arith.constant 0 : index
      %c0_50 = arith.constant 0 : index
      %86 = vector.load %arg14[%c0_49, %c0_50] : memref<8x32xf32, #tpu.memory_space<vmem>>, vector<8x32xf32>
      tpu.vector_store %arg14[%c0_49, %c0_50], %85 {strides = array<i32>} : memref<8x32xf32, #tpu.memory_space<vmem>>, vector<8x32xf32>,
    } else {
    }
    %c0_3 = arith.constant 0 : index
    %c0_4 = arith.constant 0 : index
    %6 = vector.load %arg3[%c0_3, %c0_4] : memref<1x32xf32, #tpu.memory_space<vmem>>, vector<1x32xf32>
    %c0_5 = arith.constant 0 : index
    %c0_6 = arith.constant 0 : index
    %7 = vector.load %arg4[%c0_5, %c0_6] : memref<1x32xf32, #tpu.memory_space<vmem>>, vector<1x32xf32>
    %cst = arith.constant dense<0.000000e+00> : vector<8xf32>
    %8 = vector.multi_reduction <add>, %2, %cst [1] : vector<8x32xf32> to vector<8xf32>
    %9 = vector.shape_cast %8 : vector<8xf32> to vector<8x1xf32>
    %cst_7 = arith.constant 3.200000e+01 : f32
    %10 = vector.broadcast %cst_7 : f32 to vector<8x1xf32>
    %11 = arith.divf %9, %10 : vector<8x1xf32>
    %12 = vector.broadcast %11 : vector<8x1xf32> to vector<8x32xf32>
    %13 = arith.subf %2, %12 : vector<8x32xf32>
    %14 = arith.mulf %13, %13 : vector<8x32xf32>
    %cst_8 = arith.constant dense<0.000000e+00> : vector<8xf32>
    %15 = vector.multi_reduction <add>, %14, %cst_8 [1] : vector<8x32xf32> to vector<8xf32>
    %16 = vector.shape_cast %15 : vector<8xf32> to vector<8x1xf32>
    %cst_9 = arith.constant 3.200000e+01 : f32
    %17 = vector.broadcast %cst_9 : f32 to vector<8x1xf32>
    %18 = arith.divf %16, %17 : vector<8x1xf32>
    %cst_10 = arith.constant 9.99999974E-6 : f32
    %19 = vector.broadcast %cst_10 : f32 to vector<8x1xf32>
    %20 = arith.addf %18, %19 : vector<8x1xf32>
    %21 = math.rsqrt %20 : vector<8x1xf32>
    %22 = vector.broadcast %21 : vector<8x1xf32> to vector<8x32xf32>
    %23 = arith.mulf %13, %22 : vector<8x32xf32>
    %24 = vector.broadcast %6 : vector<1x32xf32> to vector<8x32xf32>
    %25 = arith.mulf %23, %24 : vector<8x32xf32>
    %26 = vector.broadcast %7 : vector<1x32xf32> to vector<8x32xf32>
    %27 = arith.addf %25, %26 : vector<8x32xf32>
    %28 = arith.truncf %27 : vector<8x32xf32> to vector<8x32xbf16>
    %c0_11 = arith.constant 0 : index
    %c0_12 = arith.constant 0 : index
    %c0_13 = arith.constant 0 : index
    %29 = vector.load %arg5[%c0_11, %c0_12, %c0_13] : memref<1x32x8xbf16, #tpu.memory_space<vmem>>, vector<1x32x8xbf16>
    %30 = vector.shape_cast %29 : vector<1x32x8xbf16> to vector<32x8xbf16>
    %cst_14 = arith.constant dense<0.000000e+00> : vector<8x8xf32>
    %31 = tpu.matmul %28, %30, %cst_14 {dimension_numbers = #tpu.dot_dimension_numbers<[1], [0], [0], [1], [0, 0, 1, 1], [], []>} : vector<8x32xbf16>, vector<32x8xbf16>, vector<8x8xf32> -> vector<8x8xf32>
    %c0_15 = arith.constant 0 : index
    %c0_16 = arith.constant 0 : index
    %c0_17 = arith.constant 0 : index
    %32 = vector.load %arg6[%c0_15, %c0_16, %c0_17] : memref<1x1x8xf32, #tpu.memory_space<vmem>>, vector<1x1x8xf32>
    %33 = vector.shape_cast %32 : vector<1x1x8xf32> to vector<1x8xf32>
    %34 = vector.broadcast %33 : vector<1x8xf32> to vector<8x8xf32>
    %35 = arith.addf %31, %34 : vector<8x8xf32>
    %c0_18 = arith.constant 0 : index
    %c0_19 = arith.constant 0 : index
    %c0_20 = arith.constant 0 : index
    %36 = vector.load %arg7[%c0_18, %c0_19, %c0_20] : memref<1x32x8xbf16, #tpu.memory_space<vmem>>, vector<1x32x8xbf16>
    %37 = vector.shape_cast %36 : vector<1x32x8xbf16> to vector<32x8xbf16>
    %cst_21 = arith.constant dense<0.000000e+00> : vector<8x8xf32>
    %38 = tpu.matmul %28, %37, %cst_21 {dimension_numbers = #tpu.dot_dimension_numbers<[1], [0], [0], [1], [0, 0, 1, 1], [], []>} : vector<8x32xbf16>, vector<32x8xbf16>, vector<8x8xf32> -> vector<8x8xf32>
    %c0_22 = arith.constant 0 : index
    %c0_23 = arith.constant 0 : index
    %c0_24 = arith.constant 0 : index
    %39 = vector.load %arg8[%c0_22, %c0_23, %c0_24] : memref<1x1x8xf32, #tpu.memory_space<vmem>>, vector<1x1x8xf32>
    %40 = vector.shape_cast %39 : vector<1x1x8xf32> to vector<1x8xf32>
    %41 = vector.broadcast %40 : vector<1x8xf32> to vector<8x8xf32>
    %42 = arith.addf %38, %41 : vector<8x8xf32>
    %c0_25 = arith.constant 0 : index
    %c0_26 = arith.constant 0 : index
    %c0_27 = arith.constant 0 : index
    %43 = vector.load %arg9[%c0_25, %c0_26, %c0_27] : memref<1x32x8xbf16, #tpu.memory_space<vmem>>, vector<1x32x8xbf16>
    %44 = vector.shape_cast %43 : vector<1x32x8xbf16> to vector<32x8xbf16>
    %cst_28 = arith.constant dense<0.000000e+00> : vector<8x8xf32>
    %45 = tpu.matmul %28, %44, %cst_28 {dimension_numbers = #tpu.dot_dimension_numbers<[1], [0], [0], [1], [0, 0, 1, 1], [], []>} : vector<8x32xbf16>, vector<32x8xbf16>, vector<8x8xf32> -> vector<8x8xf32>
    %c0_29 = arith.constant 0 : index
    %c0_30 = arith.constant 0 : index
    %c0_31 = arith.constant 0 : index
    %46 = vector.load %arg10[%c0_29, %c0_30, %c0_31] : memref<1x1x8xf32, #tpu.memory_space<vmem>>, vector<1x1x8xf32>
    %47 = vector.shape_cast %46 : vector<1x1x8xf32> to vector<1x8xf32>
    %48 = vector.broadcast %47 : vector<1x8xf32> to vector<8x8xf32>
    %49 = arith.addf %45, %48 : vector<8x8xf32>
    %50 = arith.truncf %35 : vector<8x8xf32> to vector<8x8xbf16>
    %51 = arith.truncf %42 : vector<8x8xf32> to vector<8x8xbf16>
    %cst_32 = arith.constant dense<0.000000e+00> : vector<8x8xf32>
    %52 = tpu.matmul %50, %51, %cst_32 {dimension_numbers = #tpu.dot_dimension_numbers<[1], [1], [0], [0], [0, 0, 1, 0], [], []>} : vector<8x8xbf16>, vector<8x8xbf16>, vector<8x8xf32> -> vector<8x8xf32>
    %cst_33 = arith.constant 0.353553385 : f32
    %53 = vector.broadcast %cst_33 : f32 to vector<8x8xf32>
    %54 = arith.mulf %52, %53 : vector<8x8xf32>
    %55 = tpu.iota {dimensions = array<i32: 0>} : vector<8x8xi32>
    %56 = tpu.iota {dimensions = array<i32: 1>} : vector<8x8xi32>
    %57 = arith.cmpi sge, %55, %56 : vector<8x8xi32>
    %cst_34 = arith.constant -1.000000e+09 : f32
    %58 = vector.broadcast %cst_34 : f32 to vector<8x8xf32>
    %59 = arith.select %57, %54, %58 : vector<8x8xi1>, vector<8x8xf32>
    %cst_35 = arith.constant dense<0xFF800000> : vector<8xf32>
    %60 = vector.multi_reduction <maximumf>, %59, %cst_35 [1] : vector<8x8xf32> to vector<8xf32>
    %61 = vector.shape_cast %60 : vector<8xf32> to vector<8x1xf32>
    %62 = vector.broadcast %61 : vector<8x1xf32> to vector<8x8xf32>
    %63 = arith.subf %59, %62 : vector<8x8xf32>
    %64 = math.exp %63 : vector<8x8xf32>
    %cst_36 = arith.constant dense<0.000000e+00> : vector<8xf32>
    %65 = vector.multi_reduction <add>, %64, %cst_36 [1] : vector<8x8xf32> to vector<8xf32>
    %66 = vector.shape_cast %65 : vector<8xf32> to vector<8x1xf32>
    %67 = tpu.reciprocal %66 {approx = true} : vector<8x1xf32> -> vector<8x1xf32>
    %68 = vector.broadcast %67 : vector<8x1xf32> to vector<8x8xf32>
    %69 = arith.mulf %64, %68 : vector<8x8xf32>
    %70 = arith.truncf %69 : vector<8x8xf32> to vector<8x8xbf16>
    %71 = arith.truncf %49 : vector<8x8xf32> to vector<8x8xbf16>
    %cst_37 = arith.constant dense<0.000000e+00> : vector<8x8xf32>
    %72 = tpu.matmul %70, %71, %cst_37 {dimension_numbers = #tpu.dot_dimension_numbers<[1], [0], [0], [1], [0, 0, 1, 1], [], []>} : vector<8x8xbf16>, vector<8x8xbf16>, vector<8x8xf32> -> vector<8x8xf32>
    %c0_38 = arith.constant 0 : index
    %c0_39 = arith.constant 0 : index
    %73 = vector.load %arg14[%c0_38, %c0_39] : memref<8x32xf32, #tpu.memory_space<vmem>>, vector<8x32xf32>
    %74 = arith.truncf %72 : vector<8x8xf32> to vector<8x8xbf16>
    %c0_40 = arith.constant 0 : index
    %c0_41 = arith.constant 0 : index
    %c0_42 = arith.constant 0 : index
    %75 = vector.load %arg11[%c0_40, %c0_41, %c0_42] : memref<1x8x32xbf16, #tpu.memory_space<vmem>>, vector<1x8x32xbf16>
    %76 = vector.shape_cast %75 : vector<1x8x32xbf16> to vector<8x32xbf16>
    %cst_43 = arith.constant dense<0.000000e+00> : vector<8x32xf32>
    %77 = tpu.matmul %74, %76, %cst_43 {dimension_numbers = #tpu.dot_dimension_numbers<[1], [0], [0], [1], [0, 0, 1, 1], [], []>} : vector<8x8xbf16>, vector<8x32xbf16>, vector<8x32xf32> -> vector<8x32xf32>
    %78 = arith.addf %73, %77 : vector<8x32xf32>
    %c0_44 = arith.constant 0 : index
    %c0_45 = arith.constant 0 : index
    %79 = vector.load %arg14[%c0_44, %c0_45] : memref<8x32xf32, #tpu.memory_space<vmem>>, vector<8x32xf32>
    tpu.vector_store %arg14[%c0_44, %c0_45], %78 {strides = array<i32>} : memref<8x32xf32, #tpu.memory_space<vmem>>, vector<8x32xf32>,
    %c3_i32 = arith.constant 3 : i32
    %80 = arith.cmpi eq, %arg1, %c3_i32 : i32
    %81 = arith.extui %80 : i1 to i32
    %c0_i32_46 = arith.constant 0 : i32
    %82 = arith.cmpi ne, %81, %c0_i32_46 : i32
    scf.if %82 {
      %c0_47 = arith.constant 0 : index
      %c0_48 = arith.constant 0 : index
      %83 = vector.load %arg14[%c0_47, %c0_48] : memref<8x32xf32, #tpu.memory_space<vmem>>, vector<8x32xf32>
      %84 = arith.truncf %83 : vector<8x32xf32> to vector<8x32xbf16>
      %c0_49 = arith.constant 0 : index
      %c0_50 = arith.constant 0 : index
      %c0_51 = arith.constant 0 : index
      %85 = vector.load %arg13[%c0_49, %c0_50, %c0_51] : memref<1x8x32xbf16, #tpu.memory_space<vmem>>, vector<1x8x32xbf16>
      %86 = vector.shape_cast %85 : vector<1x8x32xbf16> to vector<8x32xbf16>
      %87 = vector.shape_cast %84 : vector<8x32xbf16> to vector<1x8x32xbf16>
      tpu.vector_store %arg13[%c0_49, %c0_50, %c0_51], %87 {strides = array<i32>} : memref<1x8x32xbf16, #tpu.memory_space<vmem>>, vector<1x8x32xbf16>,
    } else {
    }
    return
  }
  func.func @transform_0(%arg0: i32, %arg1: i32) -> (i32, i32, i32) {
    %c0_i32 = arith.constant 0 : i32
    %c0_i32_0 = arith.constant 0 : i32
    %c0_i32_1 = arith.constant 0 : i32
    return %arg0, %c0_i32, %c0_i32_0 : i32, i32, i32
  }
  func.func @transform_1(%arg0: i32, %arg1: i32) -> (i32, i32) {
    %c0_i32 = arith.constant 0 : i32
    %c0_i32_0 = arith.constant 0 : i32
    %c0_i32_1 = arith.constant 0 : i32
    return %c0_i32, %c0_i32_0 : i32, i32
  }
  func.func @transform_2(%arg0: i32, %arg1: i32) -> (i32, i32) {
    %c0_i32 = arith.constant 0 : i32
    %c0_i32_0 = arith.constant 0 : i32
    %c0_i32_1 = arith.constant 0 : i32
    return %c0_i32, %c0_i32_0 : i32, i32
  }
  func.func @transform_3(%arg0: i32, %arg1: i32) -> (i32, i32, i32) {
    %c0_i32 = arith.constant 0 : i32
    %c0_i32_0 = arith.constant 0 : i32
    %c0_i32_1 = arith.constant 0 : i32
    return %arg1, %c0_i32, %c0_i32_0 : i32, i32, i32
  }
  func.func @transform_4(%arg0: i32, %arg1: i32) -> (i32, i32, i32) {
    %c0_i32 = arith.constant 0 : i32
    %c0_i32_0 = arith.constant 0 : i32
    %c0_i32_1 = arith.constant 0 : i32
    return %arg1, %c0_i32, %c0_i32_0 : i32, i32, i32
  }
  func.func @transform_5(%arg0: i32, %arg1: i32) -> (i32, i32, i32) {
    %c0_i32 = arith.constant 0 : i32
    %c0_i32_0 = arith.constant 0 : i32
    %c0_i32_1 = arith.constant 0 : i32
    return %arg1, %c0_i32, %c0_i32_0 : i32, i32, i32
  }
  func.func @transform_6(%arg0: i32, %arg1: i32) -> (i32, i32, i32) {
    %c0_i32 = arith.constant 0 : i32
    %c0_i32_0 = arith.constant 0 : i32
    %c0_i32_1 = arith.constant 0 : i32
    return %arg1, %c0_i32, %c0_i32_0 : i32, i32, i32
  }
  func.func @transform_7(%arg0: i32, %arg1: i32) -> (i32, i32, i32) {
    %c0_i32 = arith.constant 0 : i32
    %c0_i32_0 = arith.constant 0 : i32
    %c0_i32_1 = arith.constant 0 : i32
    return %arg1, %c0_i32, %c0_i32_0 : i32, i32, i32
  }
  func.func @transform_8(%arg0: i32, %arg1: i32) -> (i32, i32, i32) {
    %c0_i32 = arith.constant 0 : i32
    %c0_i32_0 = arith.constant 0 : i32
    %c0_i32_1 = arith.constant 0 : i32
    return %arg1, %c0_i32, %c0_i32_0 : i32, i32, i32
  }
  func.func @transform_9(%arg0: i32, %arg1: i32) -> (i32, i32, i32) {
    %c0_i32 = arith.constant 0 : i32
    %c0_i32_0 = arith.constant 0 : i32
    %c0_i32_1 = arith.constant 0 : i32
    return %arg1, %c0_i32, %c0_i32_0 : i32, i32, i32
  }
  func.func @transform_10(%arg0: i32, %arg1: i32) -> (i32, i32) {
    %c0_i32 = arith.constant 0 : i32
    %c0_i32_0 = arith.constant 0 : i32
    %c0_i32_1 = arith.constant 0 : i32
    return %c0_i32, %c0_i32_0 : i32, i32
  }
  func.func @transform_11(%arg0: i32, %arg1: i32) -> (i32, i32, i32) {
    %c0_i32 = arith.constant 0 : i32
    %c0_i32_0 = arith.constant 0 : i32
    %c0_i32_1 = arith.constant 0 : i32
    return %arg0, %c0_i32, %c0_i32_0 : i32, i32, i32
  }
}

</mosaic_0001>

<bundles_post_ra>
// kernel: tpu_custom_call.1
= control target key start
LH: loop header
LB: loop body
LE: loop exit
PB: predicated region body
PF: predicated region fallthrough
CT: control target
= control target key end

     0   :  { %s1440_s0 = inlined_call_operand.vmem [shape: bf16[2,8,32], index: 0, kind: input, shape index: {}]   ;;  %s1441_s1 = inlined_call_operand.vmem [shape: f32[1,32], index: 1, kind: input, shape index: {}]   ;;  %s1442_s2 = inlined_call_operand.vmem [shape: f32[1,32], index: 2, kind: input, shape index: {}]   ;;  %s1443_s3 = inlined_call_operand.vmem [shape: bf16[4,32,8], index: 3, kind: input, shape index: {}]   ;;  %s1444_s4 = inlined_call_operand.vmem [shape: f32[4,1,8], index: 4, kind: input, shape index: {}]   ;;  %s1445_s5 = inlined_call_operand.vmem [shape: bf16[4,32,8], index: 5, kind: input, shape index: {}]   ;;  %s1446_s6 = inlined_call_operand.vmem [shape: f32[4,1,8], index: 6, kind: input, shape index: {}]   ;;  %s1447_s7 = inlined_call_operand.vmem [shape: bf16[4,32,8], index: 7, kind: input, shape index: {}]   ;;  %s1448_s8 = inlined_call_operand.vmem [shape: f32[4,1,8], index: 8, kind: input, shape index: {}]   ;;  %s1449_s9 = inlined_call_operand.vmem [shape: bf16[4,8,32], index: 9, kind: input, shape index: {}]   ;;  %s1450_s10 = inlined_call_operand.vmem [shape: f32[1,32], index: 10, kind: input, shape index: {}]   ;;  %s1451_s11 = inlined_call_operand.hbm [shape: bf16[2,8,32], index: 11, kind: output, shape index: {}]  }
   0x1   :  { %1465 = sst [smem:[#allocation17_spill]] %s1440_s0 }
   0x2   :  { %1466 = sst [smem:[#allocation18_spill]] %s1451_s11 }
   0x3   :  { %16 = vsyncpa [#allocation4], 0 }
   0x4   :  { %18 = vsyncpa [#allocation4 + $0x1], 0  ;;  %s1227_s17 = smov 0   ;;  %s1229_s18 = smov 0  }
   0x5   :  { %s1231_s19 = smov 0   ;;  %s1233_s20 = smov 0  }
   0x6   :  { %s1235_s21 = smov 0   ;;  %s1237_s22 = smov 0  }
   0x7   :  { %s1239_s23 = smov 0   ;;  %s1241_s24 = smov 0  }
   0x8 LB: > { %1467 = sst [smem:[#allocation6_spill]] %s1136_s17  ;;  %s925_s25 = sadd.s32 4294967295, %s1164_s24   ;;  %s1164_s24 = sphi %s1241_s24, %s24_s24   ;;  %s1160_s23 = sphi %s1239_s23, %s1495_s23   ;;  %s1156_s22 = sphi %s1237_s22, %s1494_s22   ;;  %s1152_s21 = sphi %s1235_s21, %s1493_s21   ;;  %s1148_s20 = sphi %s1233_s20, %s1492_s20   ;;  %s1144_s19 = sphi %s1231_s19, %s1491_s19   ;;  %s1140_s18 = sphi %s1229_s18, %s1490_s18   ;;  %s1136_s17 = sphi %s1227_s17, %s1489_s17  }
   0x9   : > { %1468 = sst [smem:[#allocation7_spill]] %s1140_s18  ;;  %s926_s26 = sadd.s32 4294967294, %s1164_s24  }
   0xa   : > { %1469 = sst [smem:[#allocation8_spill]] %s1144_s19  ;;  %s33_s27 = sadd.s32 1, %s1156_s22 }
   0xb   : > { %1470 = sst [smem:[#allocation9_spill]] %s1156_s22  ;;  %p34_p0 = scmp.ge.s32.totalorder %s33_s27, 4 }
   0xc   : > { %1471 = sst [smem:[#allocation10_spill]] %s1160_s23  ;;  %s36_s28 = sadd.s32 1, %s1160_s23 }
   0xd   : > { %1472 = sst [smem:[#allocation11_spill]] %s1164_s24  ;;  %p324_p1 = scmp.ne.s32.totalorder %s1144_s19, %s1140_s18 }
   0xe   : > { %p325_p2 = scmp.eq.s32.totalorder %s925_s25, 7  ;;  %s1497_s27 = smov (%p34_p0, %s33_s27), 0 }
   0xf   : > { %1473 = sst [smem:[#allocation12_spill]] %s1497_s27  ;;  %s1499_s28 = smov (!%p34_p0, %s36_s28), %s1160_s23 }
  0x10   : > { %p1276_p3 = por %p325_p2, %p324_p1  ;;  %p330_p4 = scmp.ne.s32.totalorder %s1140_s18, %s1136_s17 }
  0x11   : > { %p38_p5 = scmp.ge.s32.totalorder %s1499_s28, 2  ;;  %p331_p6 = scmp.eq.s32.totalorder %s926_s26, 7 }
  0x12   : > { %s1474_s29 = scalar_select %p1276_p3, 1, 0 }
  0x13   : > { %p929_p7 = scmp.ge.s32.totalorder %s1164_s24, 1  ;;  %p414_p8 = scmp.lt.s32.totalorder %s1164_s24, 9 }
  0x14   : > { %1475 = sst [smem:[#allocation13_spill]] %s1474_s29  ;;  %s1501_s28 = smov (%p38_p5, %s1499_s28), 0 }
  0x15   : > { %1476 = sst [smem:[#allocation14_spill]] %s1501_s28  ;;  %p1286_p9 = por %p331_p6, %p330_p4 }
  0x16   : > { %p415_p10 = pnand %p929_p7, %p414_p8  ;;  %s311_s12 = ssub.s32 %s1160_s23, %s1501_s28 }
  0x17   : > { %s1477_s30 = scalar_select %p1286_p9, 1, 0 }
  0x18   : > { %s314_s13 = sadd.s32 1, %s1144_s19  ;;  %p312_p11 = scmp.eq.s32.totalorder %s311_s12, 0 }
  0x19   : > { %1478 = sst [smem:[#allocation15_spill]] %s1477_s30  ;;  %418 = sbr.rel (%p415_p10) target bundleno = 1136 (0x470), region = 64 }
  0x1a   : > { %s1294_s14 = scalar_select %p312_p11, %s1144_s19, %s314_s13  }
  0x1b   : > { %s1455_s15 = sand.u32 (!%p415_p10), 1, %s1140_s18   ;;  %p481_p12 = scmp.lt.s32.totalorder (!%p415_p10), %s1152_s21, 1 }
  0x1c   : > { %1479 = sst [smem:[#allocation16_spill]] %s1294_s14  ;;  %s1300_s16 = sshll.u32 (!%p415_p10), %s1455_s15, 2 }
  0x1d   : > { %p485_p13 = scmp.lt.s32.totalorder (!%p415_p10), %s1148_s20, 3  ;;  %s1480_s0 = sld [smem:[#allocation17_spill]] (!%p415_p10) }
  0x1e   : > { %s482_s25 = scalar_select %p481_p12, %s1152_s21, 1 }
  0x1f   : > { %s1305_s26 = scalar_select %p485_p13, %s1148_s20, 3 }
  0x20   : > { %s931_s12 = sshll.u32 %s482_s25, 2  ;;  %s480_s24 = scalar_lea.vmem [#allocation3], %s1300_s16 }
  0x21   : > { %s975_s23 = sshll.u32 %s1305_s26, 4  ;;  %s500_s28 = scalar_lea.vmem %s1446_s6, %s1305_s26 }
  0x22   : > { %s1314_s15 = scalar_lea.vmem %s1443_s3, %s975_s23  ;;  %s1323_s29 = scalar_lea.vmem %s1445_s5, %s975_s23 }
  0x23   : > { %s484_s27 = scalar_lea.vmem %s1480_s0, %s931_s12  ;;  %s1332_s22 = scalar_lea.vmem %s1447_s7, %s975_s23 }
  0x24   : > { %v514_v0 = vld [vmem:[%s484_s27] sm:$0xf]  ;;  %s508_s19 = scalar_lea.vmem %s1448_s8, %s1305_s26  ;;  %s938_s27 = sshll.u32 %s1305_s26, 2 }
  0x25   : > { %v515_v1 = vunpack.c.l.bf16 %v514_v0  ;;  %s1342_s11 = scalar_lea.vmem %s1449_s9, %s938_s27  ;;  %p939_p0 = scmp.ne.s32.totalorder %s1148_s20, 0 }
  0x27   : > { %519 = sbr.rel (%p939_p0) target bundleno = 48 (0x30), region = 68 }
  0x2c   : > { %v1056_v2 = vld [vmem:[%s1450_s10] ss:$0 sm:$0xff]  ;;  %vm525_vm0 = vcmask 261120  }
  0x2d   : > { %v524_v3 = vadd.f32 %v1056_v2, %v515_v1 }
  0x2f   : > { %526 = vst.msk [vmem:[#allocation2] sm:$0xff] %vm525_vm0, %v524_v3 }
  0x30 PF: > { %vm529_vm1 = vcmask 261120   ;;  %v1166_v5 = vmov 32.0   ;;  %v979_v17 = vld [vmem:[%s1314_s15 + $0x8] sm:$0xff]  ;;  %v978_v20 = vld [vmem:[%s1314_s15] sm:$0xff]  ;;  %vm672_vm6 = vcmask 64512   ;;  %s1481_s14 = scalar_lea.vmem %s1444_s4, %s1305_s26  ;;  %vm715_vm7 = vcmask 1043456  }
  0x31   : > { %v530_v4 = vsel %vm529_vm1, %v515_v1, 0.0  ;;  %1062 = vrcp.f32 %v1166_v5  ;;  %v981_v18 = vld [vmem:[%s1323_s29 + $0x8] sm:$0xff]  ;;  %597 = vmatpush.bf16.msra.mxu0 %v979_v17  ;;  %v980_v21 = vld [vmem:[%s1323_s29] sm:$0xff]  ;;  %v693_v56 = vlaneseq  ;;  %p970_p1 = scmp.ne.s32.totalorder %s1148_s20, 3 }
  0x32   : > { %531 = vadd.xlane.f32.xlu0 %v530_v4  ;;  %v983_v19 = vld [vmem:[%s1332_s22 + $0x8] sm:$0xff]  ;;  %630 = vmatpush.bf16.msra.mxu1 %v981_v18  ;;  %v982_v22 = vld [vmem:[%s1332_s22] sm:$0xff] }
  0x33   : > { %663 = vmatpush.bf16.msra.mxu2 %v983_v19  ;;  %v1057_v32 = vld [vmem:[%s1441_s1] ss:$0 sm:$0xff]  ;;  %v694_v57 = vshrl.u32 %v693_v56, 7  ;;  %v696_v58 = vand.u32 127, %v693_v56 }
  0x34   : > { %v1058_v35 = vld [vmem:[%s1442_s2] ss:$0 sm:$0xff] }
  0x35   : > { %598 = vmatpush.bf16.msra.mxu0 %v978_v20  ;;  %v1060_v39 = vld [vmem:[%s500_s28] ss:$0 sm:$0xff]  ;;  %vm697_vm8 = vcmp.ge.s32.totalorder %v694_v57, %v696_v58 }
  0x36   : > { %631 = vmatpush.bf16.msra.mxu1 %v980_v21  ;;  %v1059_v43 = vld [vmem:[%s1481_s14] ss:$0 sm:$0xff] }
  0x37   : > { %v1063_v6 = vpop.eup %1062  ;;  %664 = vmatpush.bf16.msra.mxu2 %v982_v22  ;;  %v1061_v45 = vld [vmem:[%s508_s19] ss:$0 sm:$0xff] }
  0x38   : > { %v534_v7 = vmul.f32 32.0, %v1063_v6  ;;  %vm538_vm2 = vweird.f32 %v1063_v6  ;;  %v734_v5 = vld [vmem:[%s1342_s11] sm:$0xf] }
  0x3a   : > { %v535_v8 = vsub.f32 1.0, %v534_v7 }
  0x3c   : > { %v536_v9 = vmul.f32 %v1063_v6, %v535_v8 }
  0x3e   : > { %v537_v10 = vadd.f32 %v1063_v6, %v536_v9 }
  0x40   : > { %v539_v11 = vsel %vm538_vm2, %v1063_v6, %v537_v10  ;;  %v739_v6 = vsel %vm715_vm7, %v734_v5, 0 }
  0x41   : > { %748 = vmatpush.bf16.msrb.mxu1 %v739_v6 }
  0xa5   : > { %v532_v12 = vpop.xlane.xlu0 %531 }
  0xa6   : > { %v540_v13 = vmul.f32 %v539_v11, %v532_v12 }
  0xa8   : > { %v541_v14 = vsub.f32 %v515_v1, %v540_v13 }
  0xaa   : > { %v542_v15 = vmul.f32 %v541_v14, %v541_v14 }
  0xac   : > { %v543_v16 = vsel %vm529_vm1, %v542_v15, 0.0 }
  0xad   : > { %544 = vadd.xlane.f32.xlu0 %v543_v16 }
 0x120   : > { %v545_v23 = vpop.xlane.xlu0 %544 }
 0x121   : > { %v546_v24 = vmul.f32 %v545_v23, %v539_v11 }
 0x123   : > { %v547_v25 = vadd.f32 1e-05, %v546_v24 }
 0x125   : > { %1064 = vrsqrt.f32 %v547_v25  ;;  %vm554_vm4 = vweird.f32 %v547_v25 }
 0x12b   : > { %v1065_v26 = vpop.eup %1064 }
 0x12c   : > { %v549_v27 = vmul.f32 %v1065_v26, %v547_v25  ;;  %vm555_vm3 = vweird.f32 %v1065_v26 }
 0x12d   : > { %vm556_vm5 = vmor %vm554_vm4, %vm555_vm3 }
 0x12e   : > { %v550_v28 = vmul.f32 %v1065_v26, %v549_v27 }
 0x130   : > { %v551_v29 = vmul.f32 0.5, %v550_v28 }
 0x132   : > { %v552_v30 = vsub.f32 1.5, %v551_v29 }
 0x134   : > { %v553_v31 = vmul.f32 %v1065_v26, %v552_v30 }
 0x136   : > { %v557_v33 = vsel %vm556_vm5, %v1065_v26, %v553_v31 }
 0x137   : > { %v558_v34 = vmul.f32 %v557_v33, %v541_v14  ;;  %v732_v14 = vld [vmem:[#allocation2] sm:$0xff] }
 0x139   : > { %v562_v36 = vmul.f32 %v1057_v32, %v558_v34 }
 0x13b   : > { %v566_v37 = vadd.f32 %v1058_v35, %v562_v36 }
 0x13d   : > { %v567_v38 = vpack.c.bf16 %v566_v37, %v566_v37 }
 0x13f   : > { %948 = vmatmul.msk.bf16.vlgmr.msra.gmra.mxu0 %vm529_vm1, %v567_v38  ;;  %957 = vmatmul.msk.bf16.vlgmr.msra.gmra.mxu1 %vm529_vm1, %v567_v38 }
 0x140   : > { %966 = vmatmul.msk.bf16.vlgmr.msra.gmra.mxu2 %vm529_vm1, %v567_v38 }
 0x1bc   : > { %v600_v40 = vpop.f32.mrf.mxu0  ;;  %v633_v41 = vpop.f32.mrf.mxu1 }
 0x1bd   : > { %v634_v42 = vadd.f32 %v1060_v39, %v633_v41  ;;  %v601_v47 = vadd.f32 %v1059_v43, %v600_v40 }
 0x1bf   : > { %v671_v44 = vpack.c.bf16 %v634_v42, %v634_v42  ;;  %v670_v53 = vpack.c.bf16 %v601_v47, %v601_v47 }
 0x1c1   : > { %v677_v46 = vsel %vm672_vm6, %v671_v44, 0 }
 0x1c2   : > { %686 = vmatpush.bf16.xpose.msra.mxu3 %v677_v46 }
 0x1c3   : > { %v666_v48 = vpop.f32.mrf.mxu2 }
 0x1c4   : > { %v667_v49 = vadd.f32 %v1061_v45, %v666_v48  ;;  %v602_v50 = vpop.f32.mrf.mxu0  ;;  %v635_v51 = vpop.f32.mrf.mxu1 }
 0x1c6   : > { %v711_v52 = vpack.c.bf16 %v667_v49, %v667_v49 }
 0x1c8   : > { %v717_v54 = vsel %vm715_vm7, %v711_v52, 0 }
 0x1c9   : > { %726 = vmatpush.bf16.msrb.mxu0 %v717_v54  ;;  %967 = vmatmul.msk.bf16.vlgmr.msra.gmra.mxu3 %vm672_vm6, %v670_v53 }
 0x1cb   : > { %v668_v55 = vpop.f32.mrf.mxu2 }
 0x24c   : > { %v688_v59 = vpop.f32.mrf.mxu3 }
 0x24d   : > { %v692_v60 = vmul.f32 0.35355338, %v688_v59 }
 0x24f   : > { %v698_v61 = vsel %vm697_vm8, %v692_v60, -1e+09 }
 0x250   : > { %v699_v62 = vsel %vm672_vm6, %v698_v61, -inf }
 0x251   : > { %700 = vmax.xlane.f32.xlu1 %v699_v62 }
 0x254   : > { %v690_v63 = vpop.f32.mrf.mxu3 }
 0x2c4   : > { %v701_v0 = vpop.xlane.xlu1 %700 }
 0x2c5   : > { %v702_v1 = vsub.f32 %v698_v61, %v701_v0 }
 0x2c7   : > { %v703_v2 = vmul.f32 1.442695, %v702_v1 }
 0x2c9   : > { %1066 = vpow2.f32 %v703_v2 }
 0x2cf   : > { %v1067_v3 = vpop.eup %1066 }
 0x2d0   : > { %v705_v4 = vsel %vm672_vm6, %v1067_v3, 0.0 }
 0x2d1   : > { %706 = vadd.xlane.f32.xlu1 %v705_v4 }
 0x344   : > { %v707_v7 = vpop.xlane.xlu1 %706 }
 0x345   : > { %1068 = vrcp.f32 %v707_v7 }
 0x34b   : > { %v1069_v8 = vpop.eup %1068 }
 0x34c   : > { %v709_v9 = vmul.f32 %v1069_v8, %v1067_v3 }
 0x34e   : > { %v710_v10 = vpack.c.bf16 %v709_v9, %v709_v9 }
 0x350   : > { %968 = vmatmul.msk.bf16.vlgmr.msrb.gmra.mxu0 %vm672_vm6, %v710_v10 }
 0x3cd   : > { %v728_v11 = vpop.f32.mrf.mxu0 }
 0x3ce   : > { %v733_v12 = vpack.c.bf16 %v728_v11, %v728_v11 }
 0x3d0   : > { %969 = vmatmul.msk.bf16.vlgmr.msrb.gmra.mxu1 %vm672_vm6, %v733_v12 }
 0x3d5   : > { %v730_v13 = vpop.f32.mrf.mxu0 }
 0x44d   : > { %v750_v15 = vpop.f32.mrf.mxu1 }
 0x44e   : > { %v754_v16 = vadd.f32 %v750_v15, %v732_v14 }
 0x450   : > { %755 = vst.msk [vmem:[#allocation2] sm:$0xff] %vm529_vm1, %v754_v16 }
 0x451   : > { %759 = sbr.rel (%p970_p1) target bundleno = 1115 (0x45b), region = 72 }
 0x455   : > { %v752_v17 = vpop.f32.mrf.mxu1 }
 0x456   : > { %vm762_vm9 = vcmask 257024  }
 0x457   : > { %v760_v18 = vld [vmem:[#allocation2] sm:$0xff] }
 0x458   : > { %v761_v19 = vpack.c.bf16 %v760_v18, %v760_v18 }
 0x45a   : > { %763 = vst.msk [vmem:[%s480_s24] sm:$0xf] %vm762_vm9, %v761_v19 }
 0x45b PF: > { %s1482_s26 = sld [smem:[#allocation7_spill]]  ;;  %s972_s19 = sshll.u32 %s1152_s21, 2 }
 0x45c   : > { %s1484_s25 = sld [smem:[#allocation18_spill]]  ;;  %s777_s17 = sshll.u32 %s480_s24, 4  ;;  %s778_s17 = int_to_ptr.vmem [resolvable:$true] %s777_s17 }
 0x461   : > { %s1485_s23 = sand.u32 1, %s1482_s26  }
 0x462   : > { %s775_s0 = scalar_lea.hbm %s1484_s25, %s972_s19  ;;  %s765_s29 = scalar_lea.sflag [#allocation4], %s1485_s23 }
 0x463   : > { %s779_s20 = sshll.u32 %s775_s0, 4  ;;  %s1090_s22 = scalar_lea.hbm %s1484_s25, 8  ;;  %s780_s20 = int_to_ptr.hbm [resolvable:$true] %s779_s20 }
 0x464   : > { %s1084_s15 = sshra.s32 %s780_s20, 4  ;;  %s1085_s15 = int_to_ptr.hbm [resolvable:$true] %s1084_s15 }
 0x465   : > { %s1086_s12 = scalar_lea.hbm %s1085_s15, 4  ;;  %p1091_p6 = scmp.lt.s32.totalorder %s1085_s15, %s1484_s25 }
 0x466   : > { %p1087_p2 = scmp.ne.s32.totalorder %s1085_s15, %s1086_s12  ;;  %p1092_p7 = scmp.lt.s32.totalorder %s1090_s22, %s1086_s12 }
 0x468   : > { %p1088_p4 = pnand %p1087_p2, %p1276_p3  ;;  %p1093_p8 = por %p1092_p7, %p1091_p6 }
 0x46a   : > { %p1089_p5 = pneg %p1088_p4 }
 0x46c   : > { %p1094_p10 = pnand %p1093_p8, %p1089_p5 }
 0x46e   : > { %1097 = shalt.err (!%p1094_p10)
}
 0x46f   : > { %984 = dma.vmem_to_hbm [thread:$0]  (%p1276_p3), %s778_s17, 64, %s780_s20, %s765_s29  }
 0x470 PF: > { %s1486_s16 = sld [smem:[#allocation11_spill]] }
 0x471   : > { %s1487_s24 = sld [smem:[#allocation6_spill]] }
 0x476   : > { %p990_p11 = scmp.ge.s32.totalorder %s1486_s16, 2 }
 0x477   : > { %s791_s26 = sand.u32 1, %s1487_s24  }
 0x478   : > { %p987_p12 = pnand %p990_p11, %p1286_p9  ;;  %s792_s19 = scalar_lea.sflag [#allocation4], %s791_s26 }
 0x47a   : > { %p988_p13 = pneg %p987_p12 }
 0x47c   : > { %1131 = dma.done.wait (%p988_p13), %s792_s19, 64  }
 0x47d   : > { %1133 = vsyncadd (%p988_p13), %s792_s19, 4294967232  ;;  %s24_s24 = sadd.s32 1, %s1486_s16   ;;  %s1489_s17 = sld [smem:[#allocation7_spill]] }
 0x47e   : > { %p21_p0 = scmp.ge.s32.totalorder %s24_s24, 10   ;;  %s1490_s18 = sld [smem:[#allocation8_spill]] }
 0x47f   : > { %s1491_s19 = sld [smem:[#allocation16_spill]] }
 0x480   : > { %s1492_s20 = sld [smem:[#allocation9_spill]]  ;;  %23 = sbr.rel (!%p21_p0) target bundleno = 8 (0x8), region = 128 }
 0x481   : > { %s1493_s21 = sld [smem:[#allocation10_spill]] }
 0x482   : > { %s1494_s22 = sld [smem:[#allocation12_spill]] }
 0x483   : > { %s1495_s23 = sld [smem:[#allocation14_spill]] }
 0x485   :  { %798 = vsyncpa [#allocation4], 1 }
 0x486   :  { %800 = vsyncpa [#allocation4 + $0x1], 1 }

</bundles_post_ra>
